<compile_context>
chip_gen: v5e
topology: v5e:2x2
jax: 0.10.0
libtpu: 0.0.40
codegen_flags: <defaults>
</compile_context>

<pallas_src>
import functools
import inspect

import jax
import jax.numpy as jnp
from jax.experimental import pallas as pl
from jax.experimental.pallas import tpu as pltpu


def _round_up(x: int, m: int) -> int:
    return ((x + m - 1) // m) * m


def _cdiv(a: int, b: int) -> int:
    return -(-a // b)


def _supports_single_buffered_blockspec() -> bool:
    """One-time capability check (replaces the old bare try/except fallback)."""
    if not hasattr(pl, "Buffered"):
        return False
    try:
        return "pipeline_mode" in inspect.signature(pl.BlockSpec).parameters
    except (TypeError, ValueError):
        return False


_SINGLE_BUFFER_WEIGHTS = _supports_single_buffered_blockspec()


def _device_vmem_capacity_bytes() -> int:
    """Per-core VMEM (v5e/v6e: 128 MiB, v7x: 64 MiB); conservative fallback."""
    try:
        cap = int(getattr(pltpu.get_tpu_info(), "vmem_capacity_bytes", 0))
        if cap > 0:
            return cap
    except Exception:  # introspection only -- never masks a kernel failure
        pass
    return 64 << 20


def _mlp_kernel(x_ref, w1_ref, b_ref, w2_ref, w3_ref, o_ref, *, h_p, d_out_p):
    """Fused 3-layer MLP on one batch tile: 3 MXU matmuls, f32 bias add + ReLU."""
    x = x_ref[...]                                   # bf16 batch tile
    b1 = b_ref[0:1, :h_p]                            # packed biases (f32, resident)
    b2 = b_ref[1:2, :h_p]
    b3 = b_ref[2:3, :d_out_p]
    h = jnp.dot(x, w1_ref[...], preferred_element_type=jnp.float32) + b1
    h = jnp.maximum(h, 0.0).astype(w2_ref.dtype)     # bf16 into next MXU dot
    h = jnp.dot(h, w2_ref[...], preferred_element_type=jnp.float32) + b2
    h = jnp.maximum(h, 0.0).astype(w3_ref.dtype)
    out = jnp.dot(h, w3_ref[...], preferred_element_type=jnp.float32) + b3
    o_ref[...] = out.astype(o_ref.dtype)


def _default_block_b(batch: int, *, target: int = 256, min_steps: int = 4,
                     min_block: int = 64) -> int:
    """MXU-sized batch tiles with >= min_steps grid steps whenever B allows."""
    b8 = _round_up(max(batch, 1), 8)
    if b8 <= target:
        return b8                               # small batch: a single aligned tile
    if _cdiv(b8, target) >= min_steps:
        return target                           # large batch: 256-row tiles, >= 4 steps
    # medium batch: shrink the tile (>= 64 rows) so the pipeline gets >= 4 steps
    return max(min_block, _round_up(_cdiv(b8, min_steps), 8))


def _build_mlp_call(B_p, D_in_p, H_p, D_out_p, P, block_b, out_dtype, compute_dtype):
    w_bytes = jnp.dtype(compute_dtype).itemsize
    o_bytes = jnp.dtype(out_dtype).itemsize
    n_steps = B_p // block_b

    def resident_spec(shape):
        # Constant index_map: the block never changes -> one buffer is enough.
        if _SINGLE_BUFFER_WEIGHTS:
            return pl.BlockSpec(shape, lambda i: (0, 0), pipeline_mode=pl.Buffered(1))
        return pl.BlockSpec(shape, lambda i: (0, 0))

    # VMEM footprint with the *actual* buffer counts.
    w_buf = 1 if _SINGLE_BUFFER_WEIGHTS else 2
    weight_bytes = (D_in_p * H_p + H_p * H_p + H_p * D_out_p) * w_bytes * w_buf
    bias_bytes = 8 * P * 4 * w_buf
    stream_bytes = 2 * block_b * (D_in_p * w_bytes + D_out_p * o_bytes)   # x / out tiles
    interm_bytes = 2 * block_b * H_p * 4                                  # f32 hidden temps
    vmem_needed = weight_bytes + bias_bytes + stream_bytes + interm_bytes

    vmem_cap = int(0.88 * _device_vmem_capacity_bytes())   # device-aware clamp (v7x: 64 MiB)
    vmem_limit = min(vmem_cap, max(32 << 20, (vmem_needed * 5) // 4))

    flops = 2 * B_p * (D_in_p * H_p + H_p * H_p + H_p * D_out_p)
    bytes_accessed = (
        B_p * D_in_p * w_bytes                                  # x read once
        + (D_in_p * H_p + H_p * H_p + H_p * D_out_p) * w_bytes  # weights read once
        + 8 * P * 4                                             # packed biases
        + B_p * D_out_p * o_bytes                               # output
    )

    # Megacore sharding only when each TC would get >= 4 steps; otherwise keep the
    # (weight-HBM-bound) problem on one core so the weights are loaded only once.
    semantics = ("parallel",) if n_steps >= 8 else ("arbitrary",)

    kernel = functools.partial(_mlp_kernel, h_p=H_p, d_out_p=D_out_p)
    return pl.pallas_call(
        kernel,
        out_shape=jax.ShapeDtypeStruct((B_p, D_out_p), out_dtype),
        grid_spec=pltpu.PrefetchScalarGridSpec(
            num_scalar_prefetch=0,
            grid=(n_steps,),
            in_specs=[
                pl.BlockSpec((block_b, D_in_p), lambda i: (i, 0)),   # x (streamed)
                resident_spec((D_in_p, H_p)),                        # W1 (resident)
                resident_spec((8, P)),                               # packed biases (f32)
                resident_spec((H_p, H_p)),                           # W2 (resident)
                resident_spec((H_p, D_out_p)),                       # W3 (resident)
            ],
            out_specs=pl.BlockSpec((block_b, D_out_p), lambda i: (i, 0)),
        ),
        compiler_params=pltpu.CompilerParams(
            dimension_semantics=semantics,
            vmem_limit_bytes=int(vmem_limit),
        ),
        cost_estimate=pl.CostEstimate(
            flops=int(flops), transcendentals=0, bytes_accessed=int(bytes_accessed)),
    )


def mlp_forward(x, w1, b1, w2, b2, w3, b3, *, block_b=None,
                compute_dtype=jnp.bfloat16):
    B, D_in = x.shape
    H = w1.shape[1]
    D_out = w3.shape[1]
    out_dtype = x.dtype

    if block_b is None:
        block_b = _default_block_b(B)
    assert block_b % 8 == 0, "block_b must be a multiple of 8 (sublane alignment)"

    # Lane-dense padding: feature dims -> multiples of 128, batch -> multiple of
    # block_b. Zero padding is exact: padded hidden columns stay 0 through ReLU
    # and padded rows/columns are sliced off at the end.
    D_in_p = _round_up(D_in, 128)
    H_p = _round_up(H, 128)
    D_out_p = _round_up(D_out, 128)
    B_p = _round_up(B, block_b)
    P = max(H_p, D_out_p)

    # Residency guard against the per-device VMEM budget (device-aware, so large H
    # that fits v5e/v6e's 128 MiB is still allowed there).
    w_bytes = jnp.dtype(compute_dtype).itemsize
    resident_bytes = (D_in_p * H_p + H_p * H_p + H_p * D_out_p) * w_bytes
    resident_bytes *= 1 if _SINGLE_BUFFER_WEIGHTS else 2
    vmem_cap = _device_vmem_capacity_bytes()
    if resident_bytes > int(0.6 * vmem_cap):
        # TODO(synk): replace with a W2-streaming (nested pltpu.emit_pipeline) path.
        raise ValueError(
            f"Padded MLP weights ({resident_bytes / 2**20:.1f} MiB) exceed the VMEM "
            f"residency budget ({0.6 * vmem_cap / 2**20:.1f} MiB) on this device.")

    def pad2(a, rows, cols, dtype):
        a = a.astype(dtype)
        return jnp.pad(a, ((0, rows - a.shape[0]), (0, cols - a.shape[1])))

    x_p = pad2(x, B_p, D_in_p, compute_dtype)
    w1_p = pad2(w1, D_in_p, H_p, compute_dtype)
    w2_p = pad2(w2, H_p, H_p, compute_dtype)
    w3_p = pad2(w3, H_p, D_out_p, compute_dtype)

    # All biases packed into a single resident f32 block (one spec / one DMA).
    b_packed = jnp.zeros((8, P), jnp.float32)
    b_packed = b_packed.at[0, :H].set(b1.reshape(-1).astype(jnp.float32))
    b_packed = b_packed.at[1, :H].set(b2.reshape(-1).astype(jnp.float32))
    b_packed = b_packed.at[2, :D_out].set(b3.reshape(-1).astype(jnp.float32))

    call = _build_mlp_call(B_p, D_in_p, H_p, D_out_p, P, block_b, out_dtype,
                           compute_dtype)
    out_p = call(x_p, w1_p, b_packed, w2_p, w3_p)
    return out_p[:B, :D_out]


def init_mlp_params(key, input_dim, hidden_dim, output_dim):
    """Deterministic init mimicking nn.Linear default (uniform +-1/sqrt(fan_in)).

    Weights stored [in_features, out_features] (transposed vs. PyTorch) so the
    kernel computes y = x @ W + b; biases stored [1, out_features].
    """
    dims = [(input_dim, hidden_dim), (hidden_dim, hidden_dim), (hidden_dim, output_dim)]
    params = []
    keys = jax.random.split(key, 2 * len(dims))
    for idx, (fan_in, fan_out) in enumerate(dims):
        bound = 1.0 / (fan_in ** 0.5)
        w = jax.random.uniform(keys[2 * idx], (fan_in, fan_out),
                               minval=-bound, maxval=bound, dtype=jnp.float32)
        b = jax.random.uniform(keys[2 * idx + 1], (1, fan_out),
                               minval=-bound, maxval=bound, dtype=jnp.float32)
        params += [w, b]
    return params


def mlp_reference(x, w1, b1, w2, b2, w3, b3, compute_dtype=jnp.float32):
    cd = compute_dtype
    h = jnp.dot(x.astype(cd), w1.astype(cd), preferred_element_type=jnp.float32) + b1
    h = jnp.maximum(h, 0.0)
    h = jnp.dot(h.astype(cd), w2.astype(cd), preferred_element_type=jnp.float32) + b2
    h = jnp.maximum(h, 0.0)
    return jnp.dot(h.astype(cd), w3.astype(cd), preferred_element_type=jnp.float32) + b3


if __name__ == "__main__":
    # Small shapes consistent with MLP(input_dim, hidden_dim, output_dim).
    batch, input_dim, hidden_dim, output_dim = 24, 16, 32, 8

    key = jax.random.PRNGKey(0)
    k_x, k_p, k_x2 = jax.random.split(key, 3)
    x = jax.random.normal(k_x, (batch, input_dim), dtype=jnp.float32)
    w1, b1, w2, b2, w3, b3 = init_mlp_params(k_p, input_dim, hidden_dim, output_dim)

    out = jax.block_until_ready(mlp_forward(x, w1, b1, w2, b2, w3, b3))
    assert out.shape == (batch, output_dim)

    # Tight check vs. a reference using the same bf16-compute / f32-accumulate recipe.
    ref_bf16 = mlp_reference(x, w1, b1, w2, b2, w3, b3, compute_dtype=jnp.bfloat16)
    assert jnp.allclose(out, ref_bf16, atol=5e-3, rtol=5e-3), "mismatch vs. bf16 reference"

    # Loose sanity check vs. the pure-f32 reference (bf16 rounding tolerance).
    ref_f32 = mlp_reference(x, w1, b1, w2, b2, w3, b3)
    assert jnp.allclose(out, ref_f32, atol=7e-2, rtol=7e-2), "mismatch vs. f32 reference"

    # Second check exercising the multi-step grid path (batch padding + 4 grid steps).
    batch2 = 600
    x2 = jax.random.normal(k_x2, (batch2, input_dim), dtype=jnp.float32)
    out2 = jax.block_until_ready(mlp_forward(x2, w1, b1, w2, b2, w3, b3))
    assert out2.shape == (batch2, output_dim)
    ref2 = mlp_reference(x2, w1, b1, w2, b2, w3, b3, compute_dtype=jnp.bfloat16)
    assert jnp.allclose(out2, ref2, atol=5e-3, rtol=5e-3), "mismatch on multi-step grid"

    print("KERNEL_OK")
</pallas_src>

<mosaic_0001>
module attributes {stable_mosaic.version = 11 : i64} {
  func.func @_mlp_kernel(%arg0: i32, %arg1: memref<24x128xbf16, #tpu.memory_space<vmem>>, %arg2: memref<128x128xbf16, #tpu.memory_space<vmem>>, %arg3: memref<8x128xf32, #tpu.memory_space<vmem>>, %arg4: memref<128x128xbf16, #tpu.memory_space<vmem>>, %arg5: memref<128x128xbf16, #tpu.memory_space<vmem>>, %arg6: memref<24x128xf32, #tpu.memory_space<vmem>>) attributes {dimension_semantics = [#tpu.dimension_semantics<arbitrary>], iteration_bounds = array<i64: 1>, scalar_prefetch = 0 : i64, scratch_operands = 0 : i64, tpu.core_type = #tpu.core_type<tc>, window_params = [{transform_indices = @transform_0, window_bounds = array<i64: 24, 128>}, {pipeline_mode = #tpu.pipeline_mode<synchronous>, transform_indices = @transform_1, window_bounds = array<i64: 128, 128>}, {pipeline_mode = #tpu.pipeline_mode<synchronous>, transform_indices = @transform_2, window_bounds = array<i64: 8, 128>}, {pipeline_mode = #tpu.pipeline_mode<synchronous>, transform_indices = @transform_3, window_bounds = array<i64: 128, 128>}, {pipeline_mode = #tpu.pipeline_mode<synchronous>, transform_indices = @transform_4, window_bounds = array<i64: 128, 128>}, {transform_indices = @transform_5, window_bounds = array<i64: 24, 128>}]} {
    %c0 = arith.constant 0 : index
    %c0_0 = arith.constant 0 : index
    %0 = vector.load %arg1[%c0, %c0_0] : memref<24x128xbf16, #tpu.memory_space<vmem>>, vector<24x128xbf16>
    %c0_1 = arith.constant 0 : index
    %c0_2 = arith.constant 0 : index
    %1 = vector.load %arg3[%c0_1, %c0_2] : memref<8x128xf32, #tpu.memory_space<vmem>>, vector<1x128xf32>
    %c1 = arith.constant 1 : index
    %c0_3 = arith.constant 0 : index
    %2 = vector.load %arg3[%c1, %c0_3] : memref<8x128xf32, #tpu.memory_space<vmem>>, vector<1x128xf32>
    %c2 = arith.constant 2 : index
    %c0_4 = arith.constant 0 : index
    %3 = vector.load %arg3[%c2, %c0_4] : memref<8x128xf32, #tpu.memory_space<vmem>>, vector<1x128xf32>
    %c0_5 = arith.constant 0 : index
    %c0_6 = arith.constant 0 : index
    %4 = vector.load %arg2[%c0_5, %c0_6] : memref<128x128xbf16, #tpu.memory_space<vmem>>, vector<128x128xbf16>
    %cst = arith.constant dense<0.000000e+00> : vector<24x128xf32>
    %5 = tpu.matmul %0, %4, %cst {dimension_numbers = #tpu.dot_dimension_numbers<[1], [0], [0], [1], [0, 0, 1, 1], [], []>} : vector<24x128xbf16>, vector<128x128xbf16>, vector<24x128xf32> -> vector<24x128xf32>
    %6 = vector.broadcast %1 : vector<1x128xf32> to vector<24x128xf32>
    %7 = arith.addf %5, %6 : vector<24x128xf32>
    %cst_7 = arith.constant 0.000000e+00 : f32
    %8 = vector.broadcast %cst_7 : f32 to vector<24x128xf32>
    %9 = arith.maximumf %7, %8 : vector<24x128xf32>
    %10 = arith.truncf %9 : vector<24x128xf32> to vector<24x128xbf16>
    %c0_8 = arith.constant 0 : index
    %c0_9 = arith.constant 0 : index
    %11 = vector.load %arg4[%c0_8, %c0_9] : memref<128x128xbf16, #tpu.memory_space<vmem>>, vector<128x128xbf16>
    %cst_10 = arith.constant dense<0.000000e+00> : vector<24x128xf32>
    %12 = tpu.matmul %10, %11, %cst_10 {dimension_numbers = #tpu.dot_dimension_numbers<[1], [0], [0], [1], [0, 0, 1, 1], [], []>} : vector<24x128xbf16>, vector<128x128xbf16>, vector<24x128xf32> -> vector<24x128xf32>
    %13 = vector.broadcast %2 : vector<1x128xf32> to vector<24x128xf32>
    %14 = arith.addf %12, %13 : vector<24x128xf32>
    %cst_11 = arith.constant 0.000000e+00 : f32
    %15 = vector.broadcast %cst_11 : f32 to vector<24x128xf32>
    %16 = arith.maximumf %14, %15 : vector<24x128xf32>
    %17 = arith.truncf %16 : vector<24x128xf32> to vector<24x128xbf16>
    %c0_12 = arith.constant 0 : index
    %c0_13 = arith.constant 0 : index
    %18 = vector.load %arg5[%c0_12, %c0_13] : memref<128x128xbf16, #tpu.memory_space<vmem>>, vector<128x128xbf16>
    %cst_14 = arith.constant dense<0.000000e+00> : vector<24x128xf32>
    %19 = tpu.matmul %17, %18, %cst_14 {dimension_numbers = #tpu.dot_dimension_numbers<[1], [0], [0], [1], [0, 0, 1, 1], [], []>} : vector<24x128xbf16>, vector<128x128xbf16>, vector<24x128xf32> -> vector<24x128xf32>
    %20 = vector.broadcast %3 : vector<1x128xf32> to vector<24x128xf32>
    %21 = arith.addf %19, %20 : vector<24x128xf32>
    %c0_15 = arith.constant 0 : index
    %c0_16 = arith.constant 0 : index
    %22 = vector.load %arg6[%c0_15, %c0_16] : memref<24x128xf32, #tpu.memory_space<vmem>>, vector<24x128xf32>
    tpu.vector_store %arg6[%c0_15, %c0_16], %21 {strides = array<i32>} : memref<24x128xf32, #tpu.memory_space<vmem>>, vector<24x128xf32>,
    return
  }
  func.func @transform_0(%arg0: i32) -> (i32, i32) {
    %c0_i32 = arith.constant 0 : i32
    %c0_i32_0 = arith.constant 0 : i32
    return %arg0, %c0_i32 : i32, i32
  }
  func.func @transform_1(%arg0: i32) -> (i32, i32) {
    %c0_i32 = arith.constant 0 : i32
    %c0_i32_0 = arith.constant 0 : i32
    %c0_i32_1 = arith.constant 0 : i32
    return %c0_i32, %c0_i32_0 : i32, i32
  }
  func.func @transform_2(%arg0: i32) -> (i32, i32) {
    %c0_i32 = arith.constant 0 : i32
    %c0_i32_0 = arith.constant 0 : i32
    %c0_i32_1 = arith.constant 0 : i32
    return %c0_i32, %c0_i32_0 : i32, i32
  }
  func.func @transform_3(%arg0: i32) -> (i32, i32) {
    %c0_i32 = arith.constant 0 : i32
    %c0_i32_0 = arith.constant 0 : i32
    %c0_i32_1 = arith.constant 0 : i32
    return %c0_i32, %c0_i32_0 : i32, i32
  }
  func.func @transform_4(%arg0: i32) -> (i32, i32) {
    %c0_i32 = arith.constant 0 : i32
    %c0_i32_0 = arith.constant 0 : i32
    %c0_i32_1 = arith.constant 0 : i32
    return %c0_i32, %c0_i32_0 : i32, i32
  }
  func.func @transform_5(%arg0: i32) -> (i32, i32) {
    %c0_i32 = arith.constant 0 : i32
    %c0_i32_0 = arith.constant 0 : i32
    return %arg0, %c0_i32 : i32, i32
  }
}

</mosaic_0001>

<bundles_post_ra>
// kernel: tpu_custom_call.1
= control target key start
LH: loop header
LB: loop body
LE: loop exit
PB: predicated region body
PF: predicated region fallthrough
CT: control target
= control target key end

     0   :  { %10 = vsyncpa [#allocation3], 0  ;;  %s752_s0 = inlined_call_operand.hbm [shape: bf16[24,128], index: 0, kind: input, shape index: {}]   ;;  %s753_s1 = inlined_call_operand.hbm [shape: bf16[128,128], index: 1, kind: input, shape index: {}]   ;;  %s754_s2 = inlined_call_operand.hbm [shape: f32[8,128], index: 2, kind: input, shape index: {}]   ;;  %s755_s3 = inlined_call_operand.hbm [shape: bf16[128,128], index: 3, kind: input, shape index: {}]   ;;  %s756_s4 = inlined_call_operand.hbm [shape: bf16[128,128], index: 4, kind: input, shape index: {}]   ;;  %s757_s5 = inlined_call_operand.hbm [shape: f32[24,128], index: 5, kind: output, shape index: {}]  }
   0x1   :  { %11 = vsyncpa [#allocation6], 0 }
   0x2   :  { %12 = vsyncpa [#allocation9], 0 }
   0x3   :  { %13 = vsyncpa [#allocation4], 0  ;;  %s31_s20 = sshll.u32 %s753_s1, 4  ;;  %s694_s21 = smov [#allocation5]   ;;  %s32_s20 = int_to_ptr.hbm [resolvable:$true] %s31_s20 }
   0x4   :  { %s33_s22 = sshll.u32 %s694_s21, 4  ;;  %s55_s25 = sshll.u32 %s755_s3, 4  ;;  %s34_s22 = int_to_ptr.vmem [resolvable:$true] %s33_s22  ;;  %s56_s25 = int_to_ptr.hbm [resolvable:$true] %s55_s25 }
   0x5   :  { %s695_s26 = smov 64   ;;  %s696_s27 = smov 4  }
   0x6   :  { %39 = dma.hbm_to_vmem [thread:$0]  %s32_s20, 1024, %s34_s22, [#allocation6], %s695_s26, %s695_s26, %s696_s27  }
   0x7   :  { %s697_s28 = smov [#allocation8]   ;;  %s18_s7 = sshll.u32 %s752_s0, 4  ;;  %s19_s7 = int_to_ptr.hbm [resolvable:$true] %s18_s7 }
   0x8   :  { %s57_s29 = sshll.u32 %s697_s28, 4  ;;  %s45_s9 = sshll.u32 %s754_s2, 4  ;;  %s58_s29 = int_to_ptr.vmem [resolvable:$true] %s57_s29  ;;  %s46_s9 = int_to_ptr.hbm [resolvable:$true] %s45_s9 }
   0x9   :  { %63 = dma.hbm_to_vmem [thread:$0]  %s56_s25, 1024, %s58_s29, [#allocation9], %s695_s26, %s695_s26, %s696_s27  }
   0xa   :  { %s698_s10 = smov [#allocation2]   ;;  %s699_s3 = smov [#allocation7]  }
   0xb   :  { %s20_s11 = sshll.u32 %s698_s10, 4  ;;  %s47_s12 = sshll.u32 %s699_s3, 4  ;;  %s21_s11 = int_to_ptr.vmem [resolvable:$true] %s20_s11  ;;  %s48_s12 = int_to_ptr.vmem [resolvable:$true] %s47_s12 }
   0xc   :  { %26 = dma.hbm_to_vmem [thread:$0]  %s19_s7, 192, %s21_s11, [#allocation3], %s695_s26, %s695_s26, %s696_s27  }
   0xd   :  { %s68_s15 = sshll.u32 %s756_s4, 4  ;;  %s700_s0 = smov [#allocation10]   ;;  %s69_s15 = int_to_ptr.hbm [resolvable:$true] %s68_s15 }
   0xe   :  { %50 = dma.hbm_to_vmem [thread:$0]  %s46_s9, 128, %s48_s12, [#allocation6]  }
   0xf   :  { %s70_s16 = sshll.u32 %s700_s0, 4  ;;  %s71_s16 = int_to_ptr.vmem [resolvable:$true] %s70_s16 }
  0x10   :  { %76 = dma.hbm_to_vmem [thread:$0]  %s69_s15, 1024, %s71_s16, [#allocation9], %s695_s26, %s695_s26, %s696_s27  }
  0x11   :  { %686 = dma.done.wait [#allocation3], 192  }
  0x12   :  { %687 = vsyncadd [#allocation3], 4294967104 }
  0x13   :  { %688 = dma.done.wait [#allocation6], 1152  }
  0x14   :  { %689 = vsyncadd [#allocation6], 4294966144 }
  0x15   :  { %690 = dma.done.wait [#allocation9], 2048  }
  0x16   :  { %691 = vsyncadd [#allocation9], 4294965248  ;;  %v504_v0 = vld [vmem:[#allocation5 + $0x38] sm:$0xff]  ;;  %v503_v1 = vld [vmem:[#allocation5 + $0x30] sm:$0xff]  ;;  %s701_s2 = smov [#allocation11]   ;;  %s381_s19 = sshll.u32 %s757_s5, 4  ;;  %s382_s19 = int_to_ptr.hbm [resolvable:$true] %s381_s19 }
  0x17   :  { %178 = vmatpush.bf16.msra.mxu0 %v504_v0  ;;  %521 = vmatpush.bf16.msra.mxu3 %v504_v0  ;;  %v512_v2 = vld [vmem:[#allocation8 + $0x38] sm:$0xff]  ;;  %v511_v3 = vld [vmem:[#allocation8 + $0x30] sm:$0xff]  ;;  %v502_v4 = vld [vmem:[#allocation5 + $0x28] sm:$0xff]  ;;  %s379_s4 = sshll.u32 %s701_s2, 4  ;;  %s702_s20 = smov 128   ;;  %s380_s4 = int_to_ptr.vmem [resolvable:$true] %s379_s4 }
  0x18   :  { %266 = vmatpush.bf16.msra.mxu1 %v512_v2  ;;  %v510_v5 = vld [vmem:[#allocation8 + $0x28] sm:$0xff]  ;;  %v501_v6 = vld [vmem:[#allocation5 + $0x20] sm:$0xff]  ;;  %v509_v7 = vld [vmem:[#allocation8 + $0x20] sm:$0xff]  ;;  %s703_s21 = smov 8  }
  0x19   :  { %v500_v8 = vld [vmem:[#allocation5 + $0x18] sm:$0xff]  ;;  %v499_v9 = vld [vmem:[#allocation5 + $0x10] sm:$0xff]  ;;  %v498_v10 = vld [vmem:[#allocation5 + $0x8] sm:$0xff] }
  0x1a   :  { %v99_v11 = vld [vmem:[#allocation2 + $0x8] sm:$0xf]  ;;  %v497_v13 = vld [vmem:[#allocation5] sm:$0xff]  ;;  %v496_v14 = vld [vmem:[#allocation2] sm:$0xff] }
  0x1b   :  { %179 = vmatpush.bf16.msra.mxu0 %v503_v1  ;;  %522 = vmatpush.bf16.msra.mxu3 %v503_v1  ;;  %v125_v12 = vunpack.c.l.b16 %v99_v11  ;;  %v508_v16 = vld [vmem:[#allocation8 + $0x18] sm:$0xff]  ;;  %v507_v17 = vld [vmem:[#allocation8 + $0x10] sm:$0xff]  ;;  %v506_v18 = vld [vmem:[#allocation8 + $0x8] sm:$0xff] }
  0x1c   :  { %267 = vmatpush.bf16.msra.mxu1 %v511_v3  ;;  %v505_v19 = vld [vmem:[#allocation8] sm:$0xff]  ;;  %v520_v20 = vld [vmem:[#allocation10 + $0x38] sm:$0xff]  ;;  %v519_v22 = vld [vmem:[#allocation10 + $0x30] sm:$0xff] }
  0x1d   :  { %v127_v15 = vpack.c.b16 %v125_v12, %v125_v12  ;;  %354 = vmatpush.bf16.msra.mxu2 %v520_v20  ;;  %v539_v23 = vld [vmem:[#allocation7] ss:$0 sm:$0xff]  ;;  %v518_v24 = vld [vmem:[#allocation10 + $0x28] sm:$0xff]  ;;  %v517_v29 = vld [vmem:[#allocation10 + $0x20] sm:$0xff] }
  0x1e   :  { %v516_v37 = vld [vmem:[#allocation10 + $0x18] sm:$0xff]  ;;  %v515_v38 = vld [vmem:[#allocation10 + $0x10] sm:$0xff]  ;;  %v514_v39 = vld [vmem:[#allocation10 + $0x8] sm:$0xff] }
  0x1f   :  { %180 = vmatpush.bf16.msra.mxu0 %v502_v4  ;;  %523 = vmatpush.bf16.msra.mxu3 %v502_v4  ;;  %v513_v40 = vld [vmem:[#allocation10] sm:$0xff]  ;;  %v540_v42 = vld [vmem:[#allocation7 + $0x1] ss:$0 sm:$0xff]  ;;  %v541_v54 = vld [vmem:[#allocation7 + $0x2] ss:$0 sm:$0xff] }
  0x20   :  { %268 = vmatpush.bf16.msra.mxu1 %v510_v5 }
  0x21   :  { %355 = vmatpush.bf16.msra.mxu2 %v519_v22 }
  0x23   :  { %181 = vmatpush.bf16.msra.mxu0 %v501_v6  ;;  %524 = vmatpush.bf16.msra.mxu3 %v501_v6 }
  0x24   :  { %269 = vmatpush.bf16.msra.mxu1 %v509_v7 }
  0x25   :  { %356 = vmatpush.bf16.msra.mxu2 %v518_v24 }
  0x27   :  { %182 = vmatpush.bf16.msra.mxu0 %v500_v8  ;;  %525 = vmatpush.bf16.msra.mxu3 %v500_v8 }
  0x28   :  { %270 = vmatpush.bf16.msra.mxu1 %v508_v16 }
  0x29   :  { %357 = vmatpush.bf16.msra.mxu2 %v517_v29 }
  0x2b   :  { %183 = vmatpush.bf16.msra.mxu0 %v499_v9  ;;  %526 = vmatpush.bf16.msra.mxu3 %v499_v9 }
  0x2c   :  { %271 = vmatpush.bf16.msra.mxu1 %v507_v17 }
  0x2d   :  { %358 = vmatpush.bf16.msra.mxu2 %v516_v37 }
  0x2f   :  { %184 = vmatpush.bf16.msra.mxu0 %v498_v10  ;;  %527 = vmatpush.bf16.msra.mxu3 %v498_v10 }
  0x30   :  { %272 = vmatpush.bf16.msra.mxu1 %v506_v18 }
  0x31   :  { %359 = vmatpush.bf16.msra.mxu2 %v515_v38 }
  0x33   :  { %185 = vmatpush.bf16.msra.mxu0 %v497_v13  ;;  %528 = vmatpush.bf16.msra.mxu3 %v497_v13 }
  0x34   :  { %273 = vmatpush.bf16.msra.mxu1 %v505_v19 }
  0x35   :  { %360 = vmatpush.bf16.msra.mxu2 %v514_v39 }
  0x36   :  { %186 = vmatmul.bf16.vlgmr.msra.gmra.mxu0 %v496_v14  ;;  %191 = vmatmul.bf16.vlgmr.msra.gmra.mxu3 %v127_v15 }
  0x39   :  { %361 = vmatpush.bf16.msra.mxu2 %v513_v40 }
  0xb3   :  { %v187_v21 = vpop.f32.mrf.mxu0 }
  0xb4   :  { %v188_v26 = vadd.f32 %v539_v23, %v187_v21 }
  0xb6   :  { %v196_v30 = vmax.f32 %v188_v26, 0.0 }
  0xb9   :  { %v192_v25 = vpop.f32.mrf.mxu3 }
  0xba   :  { %v193_v34 = vadd.f32 %v539_v23, %v192_v25 }
  0xbb   :  { %v189_v27 = vpop.f32.mrf.mxu0 }
  0xbc   :  { %v190_v28 = vadd.f32 %v539_v23, %v189_v27  ;;  %v198_v35 = vmax.f32 %v193_v34, 0.0 }
  0xbe   :  { %v197_v31 = vmax.f32 %v190_v28, 0.0  ;;  %v200_v36 = vpack.c.bf16 %v198_v35, %v198_v35 }
  0xc0   :  { %v199_v32 = vpack.c.bf16 %v197_v31, %v196_v30 }
  0xc1   :  { %v194_v33 = vpop.f32.mrf.mxu3 }
  0xc2   :  { %274 = vmatmul.bf16.vlgmr.msra.gmra.mxu1 %v199_v32 }
  0xd2   :  { %279 = vmatmul.bf16.gmra.mxu1 %v200_v36 }
 0x13f   :  { %v275_v41 = vpop.f32.mrf.mxu1 }
 0x140   :  { %v276_v43 = vadd.f32 %v540_v42, %v275_v41 }
 0x142   :  { %v284_v46 = vmax.f32 %v276_v43, 0.0 }
 0x147   :  { %v277_v44 = vpop.f32.mrf.mxu1 }
 0x148   :  { %v278_v45 = vadd.f32 %v540_v42, %v277_v44 }
 0x14a   :  { %v285_v47 = vmax.f32 %v278_v45, 0.0 }
 0x14c   :  { %v287_v48 = vpack.c.bf16 %v285_v47, %v284_v46 }
 0x14e   :  { %362 = vmatmul.bf16.vlgmr.msra.gmra.mxu2 %v287_v48 }
 0x14f   :  { %v280_v49 = vpop.f32.mrf.mxu1 }
 0x150   :  { %v281_v50 = vadd.f32 %v540_v42, %v280_v49 }
 0x152   :  { %v286_v51 = vmax.f32 %v281_v50, 0.0 }
 0x154   :  { %v288_v53 = vpack.c.bf16 %v286_v51, %v286_v51 }
 0x157   :  { %v282_v52 = vpop.f32.mrf.mxu1 }
 0x15e   :  { %367 = vmatmul.bf16.gmra.mxu2 %v288_v53 }
 0x1d1   :  { %v363_v55 = vpop.f32.mrf.mxu2 }
 0x1d2   :  { %v364_v56 = vadd.f32 %v541_v54, %v363_v55 }
 0x1d4   :  { %372 = vst [vmem:[#allocation11] sm:$0xff] %v364_v56 }
 0x1d9   :  { %v365_v57 = vpop.f32.mrf.mxu2 }
 0x1da   :  { %v366_v58 = vadd.f32 %v541_v54, %v365_v57 }
 0x1dc   :  { %373 = vst [vmem:[#allocation11 + $0x8] sm:$0xff] %v366_v58 }
 0x1e1   :  { %v368_v59 = vpop.f32.mrf.mxu2 }
 0x1e2   :  { %v369_v60 = vadd.f32 %v541_v54, %v368_v59 }
 0x1e4   :  { %374 = vst [vmem:[#allocation11 + $0x10] sm:$0xff] %v369_v60 }
 0x1e5   :  { %387 = dma.vmem_to_hbm [thread:$0]  %s380_s4, 384, %s382_s19, [#allocation4], %s702_s20, %s702_s20, %s703_s21  }
 0x1e9   :  { %v370_v61 = vpop.f32.mrf.mxu2 }
 0x1ea   :  { %692 = dma.done.wait [#allocation4], 384  }
 0x1eb   :  { %693 = vsyncadd [#allocation4], 4294966912 }
 0x1ec   :  { %392 = vsyncpa [#allocation3], 1 }
 0x1ed   :  { %393 = vsyncpa [#allocation6], 1 }
 0x1ee   :  { %394 = vsyncpa [#allocation9], 1 }
 0x1ef   :  { %395 = vsyncpa [#allocation4], 1 }

</bundles_post_ra>
